<compile_context>
chip_gen: v5e
topology: v5e:2x2
jax: 0.10.0
libtpu: 0.0.40
codegen_flags: <defaults>
</compile_context>

<pallas_src>
import jax
import jax.numpy as jnp
from jax.experimental import pallas as pl
from jax.experimental.pallas import tpu as pltpu

LANES = 128


def _round_up(a: int, b: int) -> int:
    return -(-a // b) * b


def _default_block_bytes() -> int:
    """Per-generation row-tile size (bytes) for the Pallas call."""
    try:
        kind = jax.devices()[0].device_kind.lower()
    except Exception:  # e.g. no devices during AOT tracing
        kind = ""
    if "v7" in kind or "7x" in kind:
        return 4 * 1024 * 1024   # v7x: 64 MiB VMEM / 32 MiB scoped, 3.2 TB/s HBM
    return 2 * 1024 * 1024       # v5e/v6e: stay well under v5e's 16 MiB scoped default


def _hswish_kernel(x_ref, o_ref):
    # NOTE: the last grid block may be partial; the out-of-bounds rows read
    # garbage, but Pallas masks the corresponding stores, so the body must
    # stay purely elementwise (no cross-row reductions). Keep it that way.
    x = x_ref[...]
    # PyTorch Hardswish uses f32 opmath for bf16/f16 tensors; the upcast is
    # free here because the kernel is HBM-bound.
    # TODO(synk): float64 inputs (with x64 enabled) are downcast to f32 math.
    xf = x if x.dtype == jnp.float32 else x.astype(jnp.float32)
    y = xf * jnp.clip(xf + 3.0, 0.0, 6.0) / 6.0
    o_ref[...] = y.astype(o_ref.dtype)


def _hswish_xla(x: jax.Array) -> jax.Array:
    """Plain fused XLA fallback (tiny inputs / <128-element ragged tail)."""
    xf = x if x.dtype == jnp.float32 else x.astype(jnp.float32)
    return (xf * jnp.clip(xf + 3.0, 0.0, 6.0) / 6.0).astype(x.dtype)


def _hswish_pallas_2d(x2d: jax.Array, block_bytes: int) -> jax.Array:
    """Run the kernel on a lane-dense (rows, 128) slab."""
    rows = x2d.shape[0]
    dtype = x2d.dtype
    itemsize = jnp.dtype(dtype).itemsize
    # Sublane packing: 8 rows (f32), 16 (bf16/f16), 32 (8-bit).
    sub = max(8, 32 // itemsize)

    # Largest row-tile (multiple of `sub`) within block_bytes.
    max_tr = max(sub, (block_bytes // (LANES * itemsize)) // sub * sub)

    # Target >=4 grid steps when rows allow it: gives the auto-pipeline real
    # DMA/compute overlap and >=2 steps per v7x TensorCore. Prefer an even
    # step count so both cores get equal work on the "parallel" axis.
    nblocks_max = -(-rows // sub)                  # most steps possible (tr == sub)
    steps = max(4, -(-rows // max_tr))             # enough steps to keep tr <= max_tr
    steps = max(1, min(steps, nblocks_max))
    if steps > 1 and steps % 2 == 1 and steps + 1 <= nblocks_max:
        steps += 1
    tr = min(max_tr, _round_up(-(-rows // steps), sub))
    grid = (-(-rows // tr),)                       # last block may be partial (masked)

    tile_bytes = tr * LANES * itemsize
    # 2 arrays x 2 pipeline buffers x tile, plus headroom for internal scratch.
    vmem_limit = 4 * tile_bytes + 4 * 1024 * 1024

    n_elems = rows * LANES
    cost = pl.CostEstimate(
        flops=5 * n_elems,
        transcendentals=0,
        bytes_accessed=2 * n_elems * itemsize,
    )

    return pl.pallas_call(
        _hswish_kernel,
        out_shape=jax.ShapeDtypeStruct((rows, LANES), dtype),
        grid_spec=pltpu.PrefetchScalarGridSpec(
            num_scalar_prefetch=0,
            grid=grid,
            in_specs=[pl.BlockSpec((tr, LANES), lambda i: (i, 0))],
            out_specs=pl.BlockSpec((tr, LANES), lambda i: (i, 0)),
        ),
        compiler_params=pltpu.CompilerParams(
            dimension_semantics=("parallel",),
            vmem_limit_bytes=vmem_limit,
        ),
        cost_estimate=cost,
    )(x2d)


def hswish(x: jax.Array, *, block_bytes: int | None = None,
           min_pallas_elems: int = 65536) -> jax.Array:
    """x * relu6(x + 3) / 6, elementwise. Accepts any shape (e.g. NCHW)."""
    orig_shape = x.shape
    orig_dtype = x.dtype
    n = x.size

    if not jnp.issubdtype(orig_dtype, jnp.floating):
        # TODO(synk): integer inputs follow PyTorch int semantics, not a cast.
        raise NotImplementedError("hswish Pallas kernel supports float dtypes only")

    if n == 0:
        return x

    # Tiny inputs: pallas_call launch + reshape overhead dominates; one fused
    # XLA elementwise op is faster and adds no extra HBM traffic.
    if n < min_pallas_elems:
        return _hswish_xla(x)

    if block_bytes is None:
        block_bytes = _default_block_bytes()

    rows_full = n // LANES
    prefix_n = rows_full * LANES
    tail_n = n - prefix_n

    x_flat = jnp.ravel(x)  # free for contiguous inputs

    if rows_full == 0:
        # Fewer than 128 elements: nothing for the lane-dense kernel to do.
        return _hswish_xla(x_flat).reshape(orig_shape)

    # Zero-copy 128-aligned prefix goes through Pallas; the <128-element tail
    # (if any) is handled by plain XLA. This avoids the full-array pad + slice
    # round trip that would triple HBM traffic for ragged sizes.
    x_prefix = x_flat if tail_n == 0 else jax.lax.slice(x_flat, (0,), (prefix_n,))
    out_prefix = _hswish_pallas_2d(x_prefix.reshape(rows_full, LANES),
                                   block_bytes).reshape(-1)

    if tail_n == 0:
        return out_prefix.reshape(orig_shape)

    tail_out = _hswish_xla(jax.lax.slice(x_flat, (prefix_n,), (n,)))
    return jnp.concatenate([out_prefix, tail_out]).reshape(orig_shape)


def _hswish_ref(x):
    xf = x.astype(jnp.float32)
    return (xf * jnp.clip(xf + 3.0, 0.0, 6.0) / 6.0).astype(x.dtype)


if __name__ == "__main__":
    key = jax.random.PRNGKey(0)

    # 1) Module-spec shape (NCHW 2,4,16,16), forced through the Pallas path.
    x1 = jax.random.normal(key, (2, 4, 16, 16), dtype=jnp.float32) * 4.0
    y1 = hswish(x1, min_pallas_elems=0)
    jax.block_until_ready(y1)
    assert y1.shape == x1.shape and y1.dtype == x1.dtype
    assert jnp.allclose(y1, _hswish_ref(x1), atol=1e-5, rtol=1e-5)

    # 2) Ragged size (n % 128 != 0): aligned-prefix Pallas + XLA tail path.
    x2 = jax.random.normal(jax.random.fold_in(key, 1), (3, 7, 19, 23),
                           dtype=jnp.float32) * 4.0
    y2 = hswish(x2, min_pallas_elems=0)
    jax.block_until_ready(y2)
    assert y2.shape == x2.shape
    assert jnp.allclose(y2, _hswish_ref(x2), atol=1e-5, rtol=1e-5)

    # 3) bf16 path (f32 opmath inside the kernel, bf16 storage).
    x3 = (jax.random.normal(jax.random.fold_in(key, 2), (2, 8, 16, 16),
                            dtype=jnp.float32) * 4.0).astype(jnp.bfloat16)
    y3 = hswish(x3, min_pallas_elems=0)
    jax.block_until_ready(y3)
    assert y3.dtype == jnp.bfloat16
    assert jnp.allclose(y3.astype(jnp.float32),
                        _hswish_ref(x3).astype(jnp.float32),
                        atol=2e-2, rtol=2e-2)

    # 4) Small-input fast path (no pallas_call).
    x4 = jax.random.normal(jax.random.fold_in(key, 3), (2, 4, 16, 16),
                           dtype=jnp.float32)
    y4 = hswish(x4)
    jax.block_until_ready(y4)
    assert jnp.allclose(y4, _hswish_ref(x4), atol=1e-6, rtol=1e-6)

    print("KERNEL_OK")
</pallas_src>

<mosaic_0001>
module attributes {stable_mosaic.version = 11 : i64} {
  func.func @_hswish_kernel(%arg0: i32, %arg1: memref<8x128xf32, #tpu.memory_space<vmem>>, %arg2: memref<8x128xf32, #tpu.memory_space<vmem>>) attributes {dimension_semantics = [#tpu.dimension_semantics<parallel>], iteration_bounds = array<i64: 2>, scalar_prefetch = 0 : i64, scratch_operands = 0 : i64, tpu.core_type = #tpu.core_type<tc>, window_params = [{transform_indices = @transform_0, window_bounds = array<i64: 8, 128>}, {transform_indices = @transform_1, window_bounds = array<i64: 8, 128>}]} {
    %c0 = arith.constant 0 : index
    %c0_0 = arith.constant 0 : index
    %0 = vector.load %arg1[%c0, %c0_0] : memref<8x128xf32, #tpu.memory_space<vmem>>, vector<8x128xf32>
    %cst = arith.constant 3.000000e+00 : f32
    %1 = vector.broadcast %cst : f32 to vector<8x128xf32>
    %2 = arith.addf %0, %1 : vector<8x128xf32>
    %cst_1 = arith.constant 0.000000e+00 : f32
    %cst_2 = arith.constant 6.000000e+00 : f32
    %3 = vector.broadcast %cst_1 : f32 to vector<8x128xf32>
    %4 = arith.maximumf %3, %2 : vector<8x128xf32>
    %5 = vector.broadcast %cst_2 : f32 to vector<8x128xf32>
    %6 = arith.minimumf %5, %4 : vector<8x128xf32>
    %7 = arith.mulf %0, %6 : vector<8x128xf32>
    %cst_3 = arith.constant 6.000000e+00 : f32
    %8 = vector.broadcast %cst_3 : f32 to vector<8x128xf32>
    %9 = arith.divf %7, %8 : vector<8x128xf32>
    %c0_4 = arith.constant 0 : index
    %c0_5 = arith.constant 0 : index
    %10 = vector.load %arg2[%c0_4, %c0_5] : memref<8x128xf32, #tpu.memory_space<vmem>>, vector<8x128xf32>
    tpu.vector_store %arg2[%c0_4, %c0_5], %9 {strides = array<i32>} : memref<8x128xf32, #tpu.memory_space<vmem>>, vector<8x128xf32>,
    return
  }
  func.func @transform_0(%arg0: i32) -> (i32, i32) {
    %c0_i32 = arith.constant 0 : i32
    %c0_i32_0 = arith.constant 0 : i32
    return %arg0, %c0_i32 : i32, i32
  }
  func.func @transform_1(%arg0: i32) -> (i32, i32) {
    %c0_i32 = arith.constant 0 : i32
    %c0_i32_0 = arith.constant 0 : i32
    return %arg0, %c0_i32 : i32, i32
  }
}

</mosaic_0001>

<bundles_post_ra>
// kernel: tpu_custom_call.1
= control target key start
LH: loop header
LB: loop body
LE: loop exit
PB: predicated region body
PF: predicated region fallthrough
CT: control target
= control target key end

     0   :  { %6 = vsyncpa [#allocation3], 0  ;;  %s531_s0 = inlined_call_operand.hbm [shape: f32[16,128], index: 0, kind: input, shape index: {}]   ;;  %s532_s1 = inlined_call_operand.hbm [shape: f32[16,128], index: 1, kind: output, shape index: {}]  }
   0x1   :  { %8 = vsyncpa [#allocation3 + $0x1], 0 }
   0x2   :  { %9 = vsyncpa [#allocation4], 0 }
   0x3   :  { %11 = vsyncpa [#allocation4 + $0x1], 0  ;;  %s404_s6 = smov 0   ;;  %s406_s7 = smov 0  }
   0x4   :  { %s408_s8 = smov 0   ;;  %s410_s9 = smov 0  }
   0x5 LB: > { %s425_s10 = sadd.s32 4294967295, %s391_s9   ;;  %s234_s11 = sadd.s32 4294967294, %s391_s9   ;;  %s391_s9 = sphi %s410_s9, %s542_s9   ;;  %s387_s8 = sphi %s408_s8, %s541_s8   ;;  %s383_s7 = sphi %s406_s7, %s540_s7   ;;  %s379_s6 = sphi %s404_s6, %s539_s6  }
   0x6   : > { %s429_s12 = sadd.s32 1, %s391_s9   ;;  %s24_s13 = sadd.s32 1, %s387_s8 }
   0x7   : > { %s21_s14 = ssub.s32 %s391_s9, %s429_s12  ;;  %p31_p0 = scmp.ne.s32.totalorder %s387_s8, %s383_s7 }
   0x8   : > { %p22_p1 = scmp.eq.s32.totalorder %s21_s14, 0  ;;  %p32_p2 = scmp.eq.s32.totalorder %s391_s9, 0 }
   0x9   : > { %p37_p3 = scmp.ne.s32.totalorder %s383_s7, %s379_s6  ;;  %p38_p4 = scmp.eq.s32.totalorder %s425_s10, 0 }
   0xa   : > { %s441_s15 = scalar_select %p22_p1, %s387_s8, %s24_s13  }
   0xb   : > { %p443_p5 = por %p32_p2, %p31_p0  ;;  %p447_p6 = por %p38_p4, %p37_p3 }
   0xc   : > { %p61_p7 = scmp.eq.s32.totalorder %s425_s10, 1  ;;  %p67_p8 = scmp.eq.s32.totalorder %s234_s11, 1 }
   0xd   : > { %p258_p10 = scmp.lt.s32.totalorder %s391_s9, 2  ;;  %s87_s20 = sand.u32 1, %s387_s8  }
   0xe   : > { %p454_p11 = por %p61_p7, %p31_p0  ;;  %p458_p12 = por %p67_p8, %p37_p3 }
   0xf   : > { %s238_s21 = sshll.u32 %s391_s9, 3  ;;  %s237_s22 = sshll.u32 %s87_s20, 3 }
  0x10   : > { %s95_s25 = scalar_lea.hbm %s531_s0, %s238_s21  ;;  %s91_s27 = scalar_lea.vmem [#allocation2], %s237_s22 }
  0x11   : > { %s97_s26 = sshll.u32 %s95_s25, 4  ;;  %s99_s28 = sshll.u32 %s91_s27, 4  ;;  %s98_s26 = int_to_ptr.hbm [resolvable:$true] %s97_s26  ;;  %s100_s28 = int_to_ptr.vmem [resolvable:$true] %s99_s28 }
  0x12   : > { %p469_p13 = pnand %p258_p10, %p443_p5  ;;  %p239_p0 = scmp.ge.s32.totalorder %s391_s9, 1 }
  0x13   : > { %p104_p1 = scmp.lt.s32.totalorder %s391_s9, 3  ;;  %s88_s30 = scalar_lea.sflag [#allocation3], %s87_s20 }
  0x14   : > { %s295_s2 = sshra.s32 %s98_s26, 4  ;;  %p299_p3 = pneg %p469_p13  ;;  %s296_s2 = int_to_ptr.hbm [resolvable:$true] %s295_s2 }
  0x15   : > { %s297_s3 = scalar_lea.hbm %s296_s2, 8  ;;  %s302_s11 = scalar_lea.hbm %s531_s0, 16 }
  0x16   : > { %p298_p2 = scmp.ne.s32.totalorder %s296_s2, %s297_s3  ;;  %p303_p5 = scmp.lt.s32.totalorder %s296_s2, %s531_s0 }
  0x17   : > { %p304_p8 = scmp.lt.s32.totalorder %s302_s11, %s297_s3 }
  0x18   : > { %p300_p4 = pnand %p299_p3, %p298_p2 }
  0x19   : > { %p305_p10 = por %p304_p8, %p303_p5 }
  0x1a   : > { %p301_p7 = pneg %p300_p4 }
  0x1c   : > { %p306_p9 = pnand %p305_p10, %p301_p7 }
  0x1e   : > { %309 = shalt.err (!%p306_p9)
}
  0x1f   : > { %253 = dma.hbm_to_vmem [thread:$0]  (!%p469_p13), %s98_s26, 128, %s100_s28, %s88_s30  }
  0x20   : > { %p105_p2 = pnand %p239_p0, %p104_p1 }
  0x21   : > { %s490_s16 = sand.u32 (!%p105_p2), 1, %s383_s7  }
  0x22   : > { %108 = sbr.rel (%p105_p2) target bundleno = 62 (0x3e), region = 24  ;;  %s240_s20 = sshll.u32 (!%p105_p2), %s490_s16, 3 }
  0x23   : > { %s111_s21 = scalar_lea.sflag (!%p105_p2), [#allocation3], %s490_s16  ;;  %s114_s22 = scalar_lea.vmem (!%p105_p2), [#allocation2], %s240_s20 }
  0x27   : > { %370 = dma.done.wait (%p447_p6), %s111_s21, 128  }
  0x28   : > { %372 = vsyncadd (%p447_p6), %s111_s21, 4294967168  ;;  %v393_v0 = vmov 6.0   ;;  %v134_v2 = vld [vmem:[%s114_s22] sm:$0xff]  ;;  %s243_s23 = sshll.u32 %s425_s10, 3  ;;  %s133_s17 = scalar_lea.vmem [#allocation5], %s240_s20 }
  0x29   : > { %293 = vrcp.f32 %v393_v0  ;;  %v135_v3 = vadd.f32 3.0, %v134_v2  ;;  %s159_s26 = scalar_lea.hbm %s532_s1, %s243_s23  ;;  %s161_s27 = sshll.u32 %s133_s17, 4  ;;  %s162_s27 = int_to_ptr.vmem [resolvable:$true] %s161_s27 }
  0x2a   : > { %s163_s28 = sshll.u32 %s159_s26, 4  ;;  %s149_s10 = scalar_lea.sflag [#allocation4], %s490_s16  ;;  %s164_s28 = int_to_ptr.hbm [resolvable:$true] %s163_s28 }
  0x2b   : > { %v136_v5 = vmax.f32 %v135_v3, 0.0  ;;  %s339_s29 = sshra.s32 %s164_s28, 4  ;;  %s345_s4 = scalar_lea.hbm %s532_s1, 16  ;;  %s340_s29 = int_to_ptr.hbm [resolvable:$true] %s339_s29 }
  0x2c   : > { %s341_s30 = scalar_lea.hbm %s340_s29, 8  ;;  %p346_p0 = scmp.lt.s32.totalorder %s340_s29, %s532_s1 }
  0x2d   : > { %v137_v7 = vmin.f32 %v136_v5, 6.0  ;;  %p342_p6 = scmp.ne.s32.totalorder %s340_s29, %s341_s30  ;;  %p347_p1 = scmp.lt.s32.totalorder %s345_s4, %s341_s30 }
  0x2f   : > { %v294_v1 = vpop.eup %293  ;;  %v138_v9 = vmul.f32 %v137_v7, %v134_v2  ;;  %p343_p9 = pnand %p342_p6, %p454_p11  ;;  %p348_p3 = por %p347_p1, %p346_p0 }
  0x30   : > { %v140_v4 = vmul.f32 6.0, %v294_v1  ;;  %vm144_vm0 = vweird.f32 %v294_v1 }
  0x31   : > { %p344_p13 = pneg %p343_p9 }
  0x32   : > { %v141_v6 = vsub.f32 1.0, %v140_v4 }
  0x33   : > { %p349_p4 = pnand %p348_p3, %p344_p13 }
  0x34   : > { %v142_v8 = vmul.f32 %v294_v1, %v141_v6 }
  0x36   : > { %v143_v10 = vadd.f32 %v294_v1, %v142_v8 }
  0x38   : > { %v145_v11 = vsel %vm144_vm0, %v294_v1, %v143_v10 }
  0x39   : > { %v146_v12 = vmul.f32 %v145_v11, %v138_v9 }
  0x3b   : > { %147 = vst [vmem:[%s133_s17] sm:$0xff] %v146_v12 }
  0x3c   : > { %352 = shalt.err (!%p349_p4)
}
  0x3d   : > { %248 = dma.vmem_to_hbm [thread:$0]  (%p454_p11), %s162_s27, 128, %s164_s28, %s149_s10  }
  0x3e PF: > { %s175_s13 = sand.u32 1, %s379_s6   ;;  %p538_p7 = scmp.ge.s32.totalorder %s391_s9, 2 }
  0x3f   : > { %s176_s14 = scalar_lea.sflag [#allocation4], %s175_s13 }
  0x40   : > { %p255_p5 = pnand %p538_p7, %p458_p12 }
  0x42   : > { %p256_p8 = pneg %p255_p5 }
  0x44   : > { %374 = dma.done.wait (%p256_p8), %s176_s14, 128  }
  0x45   : > { %376 = vsyncadd (%p256_p8), %s176_s14, 4294967168  ;;  %p14_p10 = scmp.ge.s32.totalorder %s429_s12, 4   ;;  %s539_s6 = smov %s383_s7 }
  0x46   : > { %s540_s7 = smov %s387_s8  ;;  %s541_s8 = smov %s441_s15 }
  0x47   : > { %s542_s9 = smov %s429_s12  ;;  %16 = sbr.rel (!%p14_p10) target bundleno = 5 (0x5), region = 69 }
  0x4c   :  { %182 = vsyncpa [#allocation3], 1 }
  0x4d   :  { %184 = vsyncpa [#allocation3 + $0x1], 1 }
  0x4e   :  { %185 = vsyncpa [#allocation4], 1 }
  0x4f   :  { %187 = vsyncpa [#allocation4 + $0x1], 1 }

</bundles_post_ra>
